<compile_context>
chip_gen: v5e
topology: v5e:2x2
jax: 0.10.0
libtpu: 0.0.40
codegen_flags: <defaults>
</compile_context>

<pallas_src>
import jax
import jax.numpy as jnp
from jax.experimental import pallas as pl
from jax.experimental.pallas import tpu as pltpu

LANE = 128      # lane-padded output width
OUT_DIM = 10    # real number of classes


def _round_up(n, m):
    return ((n + m - 1) // m) * m


def fused_mlp_logsoftmax_kernel(x_ref, wf_ref, bf_ref, o_ref):
    # Single MXU matmul: [TB, 256] @ [256, 128], f32 accumulation.
    logits = jnp.dot(x_ref[...], wf_ref[...],
                     preferred_element_type=jnp.float32) + bf_ref[...]
    # Stable log_softmax over the lane axis.  Padded columns carry a -1e30
    # bias, so they never affect the max and contribute exactly 0 to the sum.
    m = jnp.max(logits, axis=1, keepdims=True)
    shifted = logits - m
    lse = jnp.log(jnp.sum(jnp.exp(shifted), axis=1, keepdims=True))
    o_ref[...] = (shifted - lse).astype(o_ref.dtype)


def mlp_forward(x, w1, b1, w2, b2, w3, b3, *,
                block_b=512, matmul_dtype=jnp.float32):
    """x: [B, 256] f32. Weights W_k: (in, out), biases: (1, out)."""
    B, K = x.shape

    # ---- trace-time algebraic fusion of the three affine layers -----------
    wf = (w1 @ w2) @ w3                               # (256, 10)
    bf = ((b1 @ w2) @ w3) + (b2 @ w3) + b3            # (1, 10)

    # ---- lane-pad output dim 10 -> 128 (zero weights, -1e30 bias) ----------
    wf_p = jnp.zeros((K, LANE), jnp.float32).at[:, :OUT_DIM].set(wf)
    bf_p = jnp.full((1, LANE), -1e30, jnp.float32).at[:, :OUT_DIM].set(bf)

    if matmul_dtype != jnp.float32:
        x = x.astype(matmul_dtype)
        wf_p = wf_p.astype(matmul_dtype)

    # ---- batch tiling -------------------------------------------------------
    tb = min(block_b, _round_up(B, 8))
    b_pad = _round_up(B, tb)
    if b_pad != B:
        x = jnp.pad(x, ((0, b_pad - B), (0, 0)))

    itemsize = jnp.dtype(x.dtype).itemsize
    cost = pl.CostEstimate(
        flops=2 * b_pad * K * LANE,
        transcendentals=b_pad * LANE,
        bytes_accessed=(b_pad * K * itemsize            # x
                        + K * LANE * itemsize           # fused weight
                        + b_pad * LANE * 4))            # output

    out = pl.pallas_call(
        fused_mlp_logsoftmax_kernel,
        out_shape=jax.ShapeDtypeStruct((b_pad, LANE), jnp.float32),
        grid=(b_pad // tb,),
        in_specs=[
            pl.BlockSpec((tb, K), lambda i: (i, 0)),       # x tile (pipelined)
            pl.BlockSpec((K, LANE), lambda i: (0, 0)),     # fused weight (resident)
            pl.BlockSpec((1, LANE), lambda i: (0, 0)),     # fused bias (resident)
        ],
        out_specs=pl.BlockSpec((tb, LANE), lambda i: (i, 0)),
        compiler_params=pltpu.CompilerParams(
            dimension_semantics=("parallel",)),
        cost_estimate=cost,
    )(x, wf_p, bf_p)

    # Drop batch padding and lane padding.
    return out[:B, :OUT_DIM]


def init_params(key):
    dims = [(256, 64), (64, 16), (16, 10)]
    params = []
    for din, dout in dims:
        kw, kb, key = jax.random.split(key, 3)
        bound = 1.0 / (din ** 0.5)          # nn.Linear-style uniform init
        w = jax.random.uniform(kw, (din, dout), jnp.float32, -bound, bound)
        b = jax.random.uniform(kb, (1, dout), jnp.float32, -bound, bound)
        params += [w, b]
    return params


def reference_forward(x, w1, b1, w2, b2, w3, b3):
    h1 = x @ w1 + b1
    h2 = h1 @ w2 + b2
    logits = h2 @ w3 + b3
    return jax.nn.log_softmax(logits, axis=1)


if __name__ == "__main__":
    key = jax.random.PRNGKey(0)
    kx, kp = jax.random.split(key)
    B = 8
    x = jax.random.normal(kx, (B, 256), jnp.float32)
    params = init_params(kp)

    out = jax.block_until_ready(mlp_forward(x, *params))

    ref = reference_forward(x, *params)
    assert out.shape == (B, OUT_DIM)
    assert jnp.allclose(out, ref, atol=1e-4, rtol=1e-4), "mismatch vs reference"
    print("KERNEL_OK")
</pallas_src>

<mosaic_0001>
module attributes {stable_mosaic.version = 11 : i64} {
  func.func @fused_mlp_logsoftmax_kernel(%arg0: i32, %arg1: memref<8x256xf32, #tpu.memory_space<vmem>>, %arg2: memref<256x128xf32, #tpu.memory_space<vmem>>, %arg3: memref<1x128xf32, #tpu.memory_space<vmem>>, %arg4: memref<8x128xf32, #tpu.memory_space<vmem>>) attributes {dimension_semantics = [#tpu.dimension_semantics<parallel>], iteration_bounds = array<i64: 1>, scalar_prefetch = 0 : i64, scratch_operands = 0 : i64, tpu.core_type = #tpu.core_type<tc>, window_params = [{transform_indices = @transform_0, window_bounds = array<i64: 8, 256>}, {pipeline_mode = #tpu.pipeline_mode<synchronous>, transform_indices = @transform_1, window_bounds = array<i64: 256, 128>}, {pipeline_mode = #tpu.pipeline_mode<synchronous>, transform_indices = @transform_2, window_bounds = array<i64: 1, 128>}, {transform_indices = @transform_3, window_bounds = array<i64: 8, 128>}]} {
    %c0 = arith.constant 0 : index
    %c0_0 = arith.constant 0 : index
    %0 = vector.load %arg1[%c0, %c0_0] : memref<8x256xf32, #tpu.memory_space<vmem>>, vector<8x256xf32>
    %c0_1 = arith.constant 0 : index
    %c0_2 = arith.constant 0 : index
    %1 = vector.load %arg2[%c0_1, %c0_2] : memref<256x128xf32, #tpu.memory_space<vmem>>, vector<256x128xf32>
    %cst = arith.constant dense<0.000000e+00> : vector<8x128xf32>
    %2 = tpu.matmul %0, %1, %cst {dimension_numbers = #tpu.dot_dimension_numbers<[1], [0], [0], [1], [0, 0, 1, 1], [], []>} : vector<8x256xf32>, vector<256x128xf32>, vector<8x128xf32> -> vector<8x128xf32>
    %c0_3 = arith.constant 0 : index
    %c0_4 = arith.constant 0 : index
    %3 = vector.load %arg3[%c0_3, %c0_4] : memref<1x128xf32, #tpu.memory_space<vmem>>, vector<1x128xf32>
    %4 = vector.broadcast %3 : vector<1x128xf32> to vector<8x128xf32>
    %5 = arith.addf %2, %4 : vector<8x128xf32>
    %cst_5 = arith.constant dense<0xFF800000> : vector<8xf32>
    %6 = vector.multi_reduction <maximumf>, %5, %cst_5 [1] : vector<8x128xf32> to vector<8xf32>
    %7 = vector.shape_cast %6 : vector<8xf32> to vector<8x1xf32>
    %8 = vector.broadcast %7 : vector<8x1xf32> to vector<8x128xf32>
    %9 = arith.subf %5, %8 : vector<8x128xf32>
    %10 = math.exp %9 : vector<8x128xf32>
    %cst_6 = arith.constant dense<0.000000e+00> : vector<8xf32>
    %11 = vector.multi_reduction <add>, %10, %cst_6 [1] : vector<8x128xf32> to vector<8xf32>
    %12 = vector.shape_cast %11 : vector<8xf32> to vector<8x1xf32>
    %13 = math.log %12 : vector<8x1xf32>
    %14 = vector.broadcast %13 : vector<8x1xf32> to vector<8x128xf32>
    %15 = arith.subf %9, %14 : vector<8x128xf32>
    %c0_7 = arith.constant 0 : index
    %c0_8 = arith.constant 0 : index
    %16 = vector.load %arg4[%c0_7, %c0_8] : memref<8x128xf32, #tpu.memory_space<vmem>>, vector<8x128xf32>
    tpu.vector_store %arg4[%c0_7, %c0_8], %15 {strides = array<i32>} : memref<8x128xf32, #tpu.memory_space<vmem>>, vector<8x128xf32>,
    return
  }
  func.func @transform_0(%arg0: i32) -> (i32, i32) {
    %c0_i32 = arith.constant 0 : i32
    %c0_i32_0 = arith.constant 0 : i32
    return %arg0, %c0_i32 : i32, i32
  }
  func.func @transform_1(%arg0: i32) -> (i32, i32) {
    %c0_i32 = arith.constant 0 : i32
    %c0_i32_0 = arith.constant 0 : i32
    %c0_i32_1 = arith.constant 0 : i32
    return %c0_i32, %c0_i32_0 : i32, i32
  }
  func.func @transform_2(%arg0: i32) -> (i32, i32) {
    %c0_i32 = arith.constant 0 : i32
    %c0_i32_0 = arith.constant 0 : i32
    %c0_i32_1 = arith.constant 0 : i32
    return %c0_i32, %c0_i32_0 : i32, i32
  }
  func.func @transform_3(%arg0: i32) -> (i32, i32) {
    %c0_i32 = arith.constant 0 : i32
    %c0_i32_0 = arith.constant 0 : i32
    return %arg0, %c0_i32 : i32, i32
  }
}

</mosaic_0001>

<bundles_post_ra>
// kernel: tpu_custom_call.1
= control target key start
LH: loop header
LB: loop body
LE: loop exit
PB: predicated region body
PF: predicated region fallthrough
CT: control target
= control target key end

     0   :  { %8 = vsyncpa [#allocation3], 0  ;;  %s277_s0 = inlined_call_operand.hbm [shape: f32[8,256], index: 0, kind: input, shape index: {}]   ;;  %s278_s1 = inlined_call_operand.hbm [shape: f32[256,128], index: 1, kind: input, shape index: {}]   ;;  %s279_s2 = inlined_call_operand.vmem [shape: f32[1,128], index: 2, kind: input, shape index: {}]   ;;  %s280_s3 = inlined_call_operand.hbm [shape: f32[8,128], index: 3, kind: output, shape index: {}]  }
   0x1   :  { %9 = vsyncpa [#allocation6], 0 }
   0x2   :  { %10 = vsyncpa [#allocation4], 0  ;;  %s16_s14 = sshll.u32 %s277_s0, 4  ;;  %s240_s15 = smov [#allocation2]   ;;  %s17_s14 = int_to_ptr.hbm [resolvable:$true] %s16_s14 }
   0x3   :  { %s18_s16 = sshll.u32 %s240_s15, 4  ;;  %s26_s19 = sshll.u32 %s278_s1, 4  ;;  %s19_s16 = int_to_ptr.vmem [resolvable:$true] %s18_s16  ;;  %s27_s19 = int_to_ptr.hbm [resolvable:$true] %s26_s19 }
   0x4   :  { %21 = dma.hbm_to_vmem [thread:$0]  %s17_s14, 256, %s19_s16, [#allocation3]  }
   0x5   :  { %s241_s20 = smov [#allocation5]   ;;  %s242_s22 = smov 128  }
   0x6   :  { %s28_s21 = sshll.u32 %s241_s20, 4  ;;  %s243_s23 = smov 8   ;;  %s29_s21 = int_to_ptr.vmem [resolvable:$true] %s28_s21 }
   0x7   :  { %34 = dma.hbm_to_vmem [thread:$0]  %s27_s19, 4096, %s29_s21, [#allocation6], %s242_s22, %s242_s22, %s243_s23  }
   0x8   :  { %234 = dma.done.wait [#allocation3], 256  }
   0x9   :  { %235 = vsyncadd [#allocation3], 4294967040 }
   0xa   :  { %236 = dma.done.wait [#allocation6], 4096  }
   0xb   :  { %237 = vsyncadd [#allocation6], 4294963200  ;;  %v62_v0 = vld [vmem:[#allocation5 + $0x78] sm:$0xff]  ;;  %v61_v1 = vld [vmem:[#allocation5 + $0x70] sm:$0xff]  ;;  %s244_s24 = smov [#allocation7]  }
   0xc   :  { %v78_v2 = vld [vmem:[#allocation5 + $0xf8] sm:$0xff]  ;;  %83 = vmatpush.msra.mxu0 %v62_v0  ;;  %v77_v3 = vld [vmem:[#allocation5 + $0xf0] sm:$0xff]  ;;  %v60_v4 = vld [vmem:[#allocation5 + $0x68] sm:$0xff]  ;;  %s139_s25 = sshll.u32 %s244_s24, 4  ;;  %s140_s25 = int_to_ptr.vmem [resolvable:$true] %s139_s25 }
   0xd   :  { %103 = vmatpush.msra.mxu1 %v78_v2  ;;  %v76_v5 = vld [vmem:[#allocation5 + $0xe8] sm:$0xff]  ;;  %v59_v6 = vld [vmem:[#allocation5 + $0x60] sm:$0xff]  ;;  %v58_v8 = vld [vmem:[#allocation5 + $0x58] sm:$0xff] }
   0xe   :  { %84 = vmatpush.msra.mxu0 %v61_v1  ;;  %v75_v7 = vld [vmem:[#allocation5 + $0xe0] sm:$0xff]  ;;  %v74_v9 = vld [vmem:[#allocation5 + $0xd8] sm:$0xff]  ;;  %v57_v10 = vld [vmem:[#allocation5 + $0x50] sm:$0xff] }
   0xf   :  { %104 = vmatpush.msra.mxu1 %v77_v3  ;;  %v73_v11 = vld [vmem:[#allocation5 + $0xd0] sm:$0xff]  ;;  %v56_v12 = vld [vmem:[#allocation5 + $0x48] sm:$0xff]  ;;  %v55_v14 = vld [vmem:[#allocation5 + $0x40] sm:$0xff] }
  0x10   :  { %85 = vmatpush.msra.mxu0 %v60_v4  ;;  %v72_v13 = vld [vmem:[#allocation5 + $0xc8] sm:$0xff]  ;;  %v71_v15 = vld [vmem:[#allocation5 + $0xc0] sm:$0xff]  ;;  %v54_v16 = vld [vmem:[#allocation5 + $0x38] sm:$0xff] }
  0x11   :  { %105 = vmatpush.msra.mxu1 %v76_v5  ;;  %v70_v17 = vld [vmem:[#allocation5 + $0xb8] sm:$0xff]  ;;  %v53_v18 = vld [vmem:[#allocation5 + $0x30] sm:$0xff]  ;;  %v52_v20 = vld [vmem:[#allocation5 + $0x28] sm:$0xff] }
  0x12   :  { %86 = vmatpush.msra.mxu0 %v59_v6  ;;  %v69_v19 = vld [vmem:[#allocation5 + $0xb0] sm:$0xff]  ;;  %v68_v21 = vld [vmem:[#allocation5 + $0xa8] sm:$0xff]  ;;  %v51_v22 = vld [vmem:[#allocation5 + $0x20] sm:$0xff] }
  0x13   :  { %106 = vmatpush.msra.mxu1 %v75_v7  ;;  %v67_v23 = vld [vmem:[#allocation5 + $0xa0] sm:$0xff]  ;;  %v50_v24 = vld [vmem:[#allocation5 + $0x18] sm:$0xff]  ;;  %v49_v26 = vld [vmem:[#allocation5 + $0x10] sm:$0xff] }
  0x14   :  { %87 = vmatpush.msra.mxu0 %v58_v8  ;;  %v66_v25 = vld [vmem:[#allocation5 + $0x98] sm:$0xff]  ;;  %v65_v27 = vld [vmem:[#allocation5 + $0x90] sm:$0xff]  ;;  %v48_v28 = vld [vmem:[#allocation5 + $0x8] sm:$0xff] }
  0x15   :  { %107 = vmatpush.msra.mxu1 %v74_v9  ;;  %v64_v29 = vld [vmem:[#allocation5 + $0x88] sm:$0xff]  ;;  %v47_v30 = vld [vmem:[#allocation5] sm:$0xff]  ;;  %v45_v32 = vld [vmem:[#allocation2] sm:$0xff] }
  0x16   :  { %88 = vmatpush.msra.mxu0 %v57_v10  ;;  %v63_v31 = vld [vmem:[#allocation5 + $0x80] sm:$0xff]  ;;  %v46_v33 = vld [vmem:[#allocation2 + $0x8] sm:$0xff]  ;;  %v157_v34 = vld [vmem:[%s279_s2] ss:$0 sm:$0xff]  ;;  %s141_s2 = sshll.u32 %s280_s3, 4  ;;  %s142_s2 = int_to_ptr.hbm [resolvable:$true] %s141_s2 }
  0x17   :  { %108 = vmatpush.msra.mxu1 %v73_v11 }
  0x18   :  { %89 = vmatpush.msra.mxu0 %v56_v12 }
  0x19   :  { %109 = vmatpush.msra.mxu1 %v72_v13 }
  0x1a   :  { %90 = vmatpush.msra.mxu0 %v55_v14 }
  0x1b   :  { %110 = vmatpush.msra.mxu1 %v71_v15 }
  0x1c   :  { %91 = vmatpush.msra.mxu0 %v54_v16 }
  0x1d   :  { %111 = vmatpush.msra.mxu1 %v70_v17 }
  0x1e   :  { %92 = vmatpush.msra.mxu0 %v53_v18 }
  0x1f   :  { %112 = vmatpush.msra.mxu1 %v69_v19 }
  0x20   :  { %93 = vmatpush.msra.mxu0 %v52_v20 }
  0x21   :  { %113 = vmatpush.msra.mxu1 %v68_v21 }
  0x22   :  { %94 = vmatpush.msra.mxu0 %v51_v22 }
  0x23   :  { %114 = vmatpush.msra.mxu1 %v67_v23 }
  0x24   :  { %95 = vmatpush.msra.mxu0 %v50_v24 }
  0x25   :  { %115 = vmatpush.msra.mxu1 %v66_v25 }
  0x26   :  { %96 = vmatpush.msra.mxu0 %v49_v26 }
  0x27   :  { %116 = vmatpush.msra.mxu1 %v65_v27 }
  0x28   :  { %97 = vmatpush.msra.mxu0 %v48_v28 }
  0x29   :  { %117 = vmatpush.msra.mxu1 %v64_v29 }
  0x2a   :  { %98 = vmatpush.msra.mxu0 %v47_v30 }
  0x2b   :  { %118 = vmatpush.msra.mxu1 %v63_v31  ;;  %99 = vmatmul.f32.vlgmr.msra.gmra.mxu0 %v45_v32 }
  0x2c   :  { %119 = vmatmul.f32.vlgmr.msra.gmra.mxu1 %v46_v33 }
  0xa8   :  { %v100_v35 = vpop.f32.mrf.mxu0 }
  0xa9   :  { %v120_v36 = vpop.f32.mrf.mxu1  ;;  %v101_v37 = vadd.f32 %v157_v34, %v100_v35 }
  0xab   :  { %v121_v38 = vadd.f32 %v120_v36, %v101_v37 }
  0xad   :  { %123 = vmax.xlane.f32.xlu0 %v121_v38 }
 0x120   :  { %v124_v39 = vpop.xlane.xlu0 %123 }
 0x121   :  { %v125_v40 = vsub.f32 %v121_v38, %v124_v39 }
 0x123   :  { %v126_v41 = vmul.f32 1.442695, %v125_v40 }
 0x125   :  { %158 = vpow2.f32 %v126_v41 }
 0x12b   :  { %v159_v42 = vpop.eup %158 }
 0x12c   :  { %128 = vadd.xlane.f32.xlu0 %v159_v42 }
 0x19f   :  { %v129_v43 = vpop.xlane.xlu0 %128 }
 0x1a0   :  { %160 = vlog2.f32 %v129_v43 }
 0x1a6   :  { %v161_v44 = vpop.eup %160 }
 0x1a7   :  { %v131_v45 = vmul.f32 0.6931472, %v161_v44 }
 0x1a9   :  { %v132_v46 = vsub.f32 %v125_v40, %v131_v45 }
 0x1ab   :  { %133 = vst [vmem:[#allocation7] sm:$0xff] %v132_v46 }
 0x1ac   :  { %144 = dma.vmem_to_hbm [thread:$0]  %s140_s25, 128, %s142_s2, [#allocation4]  }
 0x1ad   :  { %238 = dma.done.wait [#allocation4], 128  }
 0x1ae   :  { %239 = vsyncadd [#allocation4], 4294967168 }
 0x1af   :  { %149 = vsyncpa [#allocation3], 1 }
 0x1b0   :  { %150 = vsyncpa [#allocation6], 1 }
 0x1b1   :  { %151 = vsyncpa [#allocation4], 1 }

</bundles_post_ra>
